<compile_context>
chip_gen: v7x
topology: tpu7x:2x2x1
jax: 0.10.0
libtpu: 0.0.40
codegen_flags: <defaults>
</compile_context>

<pallas_src>
import jax
import jax.numpy as jnp
from jax.experimental import pallas as pl
from jax.experimental.pallas import tpu as pltpu

LEAKY_SLOPE = 0.01   # nn.LeakyReLU default negative_slope
LANES = 128          # TPU vreg lane width


def _round_up(x, m):
    return (x + m - 1) // m * m


def _actor_mlp_kernel(x_ref, w_ref, b_ref, o_ref):
    """One M-tile of rows through the whole 4-layer MLP.

    x_ref: (tile_m, D)  bf16   activations (zero-padded lanes)
    w_ref: (4, D, D)    bf16   packed, zero-padded weights (resident in VMEM)
    b_ref: (4, 1, D)    f32    packed, zero-padded biases  (resident in VMEM)
    o_ref: (tile_m, D)  f32    lane-dense output (sliced to A in the wrapper)
    """
    h = x_ref[...]                                         # bf16
    # Three hidden layers: bf16 matmul, f32 accumulate, f32 bias + leaky-relu.
    for layer in range(3):
        z = jnp.dot(h, w_ref[layer],
                    preferred_element_type=jnp.float32) + b_ref[layer]
        z = jnp.maximum(z, LEAKY_SLOPE * z)                # leaky-relu, f32
        h = z.astype(jnp.bfloat16)                         # re-feed MXU in bf16
    # Final linear layer (no activation).
    out = jnp.dot(h, w_ref[3],
                  preferred_element_type=jnp.float32) + b_ref[3]
    o_ref[...] = out.astype(o_ref.dtype)


def actor_forward(x, params, *, tile_m=256):
    """x: (batch, n, features) float32 -> mean: (batch, n, num_actions)."""
    (w1, b1), (w2, b2), (w3, b3), (w4, b4) = params
    B, N, F = x.shape
    H = w1.shape[1]
    A = w4.shape[1]
    M = B * N

    # Common padded width for the packed weight slab (covers F, H and A).
    D = max(_round_up(F, LANES), _round_up(H, LANES), _round_up(A, LANES))

    # M-tile: multiple of 8 sublanes, capped at tile_m rows.
    tile = min(tile_m, _round_up(M, 8))
    Mp = _round_up(M, tile)
    grid = (Mp // tile,)

    # --- One-time wrapper-side packing / padding (zero padding is exact). ---
    def pad_w(w):
        return jnp.pad(w, ((0, D - w.shape[0]), (0, D - w.shape[1])))

    def pad_b(b):
        return jnp.pad(b, (0, D - b.shape[0]))

    w_slab = jnp.stack([pad_w(w1), pad_w(w2), pad_w(w3), pad_w(w4)]
                       ).astype(jnp.bfloat16)                    # (4, D, D)
    b_slab = jnp.stack([pad_b(b1), pad_b(b2), pad_b(b3), pad_b(b4)]
                       ).reshape(4, 1, D).astype(jnp.float32)    # (4, 1, D)

    x2d = x.reshape(M, F)
    x_pad = jnp.pad(x2d, ((0, Mp - M), (0, D - F))).astype(jnp.bfloat16)

    out_pad = pl.pallas_call(
        _actor_mlp_kernel,
        out_shape=jax.ShapeDtypeStruct((Mp, D), jnp.float32),
        grid_spec=pltpu.PrefetchScalarGridSpec(
            num_scalar_prefetch=0,
            grid=grid,
            in_specs=[
                # Activation rows: pipelined per grid step.
                pl.BlockSpec((tile, D), lambda i: (i, 0)),
                # Weights / biases: constant block -> stay VMEM-resident.
                pl.BlockSpec((4, D, D), lambda i: (0, 0, 0)),
                pl.BlockSpec((4, 1, D), lambda i: (0, 0, 0)),
            ],
            out_specs=pl.BlockSpec((tile, D), lambda i: (i, 0)),
        ),
        compiler_params=pltpu.CompilerParams(
            dimension_semantics=("parallel",),        # shard M across TCs (v7x)
            vmem_limit_bytes=32 * 1024 * 1024,        # explicit v7x-safe budget
        ),
    )(x_pad, w_slab, b_slab)

    return out_pad[:M, :A].reshape(B, N, A)


def init_params(key, features, hidden, num_actions):
    """Deterministic synthetic params. Weights stored as (in, out) so the
    kernel computes x @ W (equivalent to PyTorch's x @ weight.T)."""
    sizes = [(features, hidden), (hidden, hidden),
             (hidden, hidden), (hidden, num_actions)]
    params = []
    for i, (fan_in, fan_out) in enumerate(sizes):
        kw, kb = jax.random.split(jax.random.fold_in(key, i))
        bound = 1.0 / jnp.sqrt(fan_in)   # mimic nn.Linear's U(-1/sqrt(in), ...)
        w = jax.random.uniform(kw, (fan_in, fan_out), jnp.float32, -bound, bound)
        b = jax.random.uniform(kb, (fan_out,), jnp.float32, -bound, bound)
        params.append((w, b))
    return params


if __name__ == "__main__":
    # state_dim = (n, features), action_dim = (n, num_actions), hidden_layers=64
    batch, n, features = 2, 8, 16
    num_actions = 4
    hidden = 64

    key = jax.random.PRNGKey(0)
    k_x, k_p = jax.random.split(key)

    x = jax.random.normal(k_x, (batch, n, features), jnp.float32)
    params = init_params(k_p, features, hidden, num_actions)

    mean = actor_forward(x, params)
    mean = jax.block_until_ready(mean)

    # Reference check in plain JAX (f32 module semantics). bf16 matmul inputs
    # in the kernel -> loosened tolerance.
    def ref_forward(x, params):
        h = x
        for i, (w, b) in enumerate(params):
            h = h @ w + b
            if i < len(params) - 1:
                h = jnp.where(h > 0, h, LEAKY_SLOPE * h)
        return h

    ref = ref_forward(x, params)
    assert mean.shape == (batch, n, num_actions)
    assert jnp.allclose(mean, ref, atol=3e-2, rtol=3e-2), (
        float(jnp.max(jnp.abs(mean - ref))))

    print("KERNEL_OK")
</pallas_src>

<mosaic_0001>
module attributes {stable_mosaic.version = 11 : i64} {
  func.func @_actor_mlp_kernel(%arg0: i32, %arg1: memref<16x128xbf16, #tpu.memory_space<vmem>>, %arg2: memref<4x128x128xbf16, #tpu.memory_space<vmem>>, %arg3: memref<4x1x128xf32, #tpu.memory_space<vmem>>, %arg4: memref<16x128xf32, #tpu.memory_space<vmem>>) attributes {dimension_semantics = [#tpu.dimension_semantics<parallel>], iteration_bounds = array<i64: 1>, scalar_prefetch = 0 : i64, scratch_operands = 0 : i64, tpu.core_type = #tpu.core_type<tc>, window_params = [{transform_indices = @transform_0, window_bounds = array<i64: 16, 128>}, {pipeline_mode = #tpu.pipeline_mode<synchronous>, transform_indices = @transform_1, window_bounds = array<i64: 4, 128, 128>}, {pipeline_mode = #tpu.pipeline_mode<synchronous>, transform_indices = @transform_2, window_bounds = array<i64: 4, 1, 128>}, {transform_indices = @transform_3, window_bounds = array<i64: 16, 128>}]} {
    %c0 = arith.constant 0 : index
    %c0_0 = arith.constant 0 : index
    %0 = vector.load %arg1[%c0, %c0_0] : memref<16x128xbf16, #tpu.memory_space<vmem>>, vector<16x128xbf16>
    %c0_1 = arith.constant 0 : index
    %c0_2 = arith.constant 0 : index
    %c0_3 = arith.constant 0 : index
    %1 = vector.load %arg2[%c0_1, %c0_2, %c0_3] : memref<4x128x128xbf16, #tpu.memory_space<vmem>>, vector<1x128x128xbf16>
    %2 = vector.shape_cast %1 : vector<1x128x128xbf16> to vector<128x128xbf16>
    %cst = arith.constant dense<0.000000e+00> : vector<16x128xf32>
    %3 = tpu.matmul %0, %2, %cst {dimension_numbers = #tpu.dot_dimension_numbers<[1], [0], [0], [1], [0, 0, 1, 1], [], []>} : vector<16x128xbf16>, vector<128x128xbf16>, vector<16x128xf32> -> vector<16x128xf32>
    %c0_4 = arith.constant 0 : index
    %c0_5 = arith.constant 0 : index
    %c0_6 = arith.constant 0 : index
    %4 = vector.load %arg3[%c0_4, %c0_5, %c0_6] : memref<4x1x128xf32, #tpu.memory_space<vmem>>, vector<1x1x128xf32>
    %5 = vector.shape_cast %4 : vector<1x1x128xf32> to vector<1x128xf32>
    %6 = vector.broadcast %5 : vector<1x128xf32> to vector<16x128xf32>
    %7 = arith.addf %3, %6 : vector<16x128xf32>
    %cst_7 = arith.constant 0.00999999977 : f32
    %8 = vector.broadcast %cst_7 : f32 to vector<16x128xf32>
    %9 = arith.mulf %8, %7 : vector<16x128xf32>
    %10 = arith.maximumf %7, %9 : vector<16x128xf32>
    %11 = arith.truncf %10 : vector<16x128xf32> to vector<16x128xbf16>
    %c1 = arith.constant 1 : index
    %c0_8 = arith.constant 0 : index
    %c0_9 = arith.constant 0 : index
    %12 = vector.load %arg2[%c1, %c0_8, %c0_9] : memref<4x128x128xbf16, #tpu.memory_space<vmem>>, vector<1x128x128xbf16>
    %13 = vector.shape_cast %12 : vector<1x128x128xbf16> to vector<128x128xbf16>
    %cst_10 = arith.constant dense<0.000000e+00> : vector<16x128xf32>
    %14 = tpu.matmul %11, %13, %cst_10 {dimension_numbers = #tpu.dot_dimension_numbers<[1], [0], [0], [1], [0, 0, 1, 1], [], []>} : vector<16x128xbf16>, vector<128x128xbf16>, vector<16x128xf32> -> vector<16x128xf32>
    %c1_11 = arith.constant 1 : index
    %c0_12 = arith.constant 0 : index
    %c0_13 = arith.constant 0 : index
    %15 = vector.load %arg3[%c1_11, %c0_12, %c0_13] : memref<4x1x128xf32, #tpu.memory_space<vmem>>, vector<1x1x128xf32>
    %16 = vector.shape_cast %15 : vector<1x1x128xf32> to vector<1x128xf32>
    %17 = vector.broadcast %16 : vector<1x128xf32> to vector<16x128xf32>
    %18 = arith.addf %14, %17 : vector<16x128xf32>
    %cst_14 = arith.constant 0.00999999977 : f32
    %19 = vector.broadcast %cst_14 : f32 to vector<16x128xf32>
    %20 = arith.mulf %19, %18 : vector<16x128xf32>
    %21 = arith.maximumf %18, %20 : vector<16x128xf32>
    %22 = arith.truncf %21 : vector<16x128xf32> to vector<16x128xbf16>
    %c2 = arith.constant 2 : index
    %c0_15 = arith.constant 0 : index
    %c0_16 = arith.constant 0 : index
    %23 = vector.load %arg2[%c2, %c0_15, %c0_16] : memref<4x128x128xbf16, #tpu.memory_space<vmem>>, vector<1x128x128xbf16>
    %24 = vector.shape_cast %23 : vector<1x128x128xbf16> to vector<128x128xbf16>
    %cst_17 = arith.constant dense<0.000000e+00> : vector<16x128xf32>
    %25 = tpu.matmul %22, %24, %cst_17 {dimension_numbers = #tpu.dot_dimension_numbers<[1], [0], [0], [1], [0, 0, 1, 1], [], []>} : vector<16x128xbf16>, vector<128x128xbf16>, vector<16x128xf32> -> vector<16x128xf32>
    %c2_18 = arith.constant 2 : index
    %c0_19 = arith.constant 0 : index
    %c0_20 = arith.constant 0 : index
    %26 = vector.load %arg3[%c2_18, %c0_19, %c0_20] : memref<4x1x128xf32, #tpu.memory_space<vmem>>, vector<1x1x128xf32>
    %27 = vector.shape_cast %26 : vector<1x1x128xf32> to vector<1x128xf32>
    %28 = vector.broadcast %27 : vector<1x128xf32> to vector<16x128xf32>
    %29 = arith.addf %25, %28 : vector<16x128xf32>
    %cst_21 = arith.constant 0.00999999977 : f32
    %30 = vector.broadcast %cst_21 : f32 to vector<16x128xf32>
    %31 = arith.mulf %30, %29 : vector<16x128xf32>
    %32 = arith.maximumf %29, %31 : vector<16x128xf32>
    %33 = arith.truncf %32 : vector<16x128xf32> to vector<16x128xbf16>
    %c3 = arith.constant 3 : index
    %c0_22 = arith.constant 0 : index
    %c0_23 = arith.constant 0 : index
    %34 = vector.load %arg2[%c3, %c0_22, %c0_23] : memref<4x128x128xbf16, #tpu.memory_space<vmem>>, vector<1x128x128xbf16>
    %35 = vector.shape_cast %34 : vector<1x128x128xbf16> to vector<128x128xbf16>
    %cst_24 = arith.constant dense<0.000000e+00> : vector<16x128xf32>
    %36 = tpu.matmul %33, %35, %cst_24 {dimension_numbers = #tpu.dot_dimension_numbers<[1], [0], [0], [1], [0, 0, 1, 1], [], []>} : vector<16x128xbf16>, vector<128x128xbf16>, vector<16x128xf32> -> vector<16x128xf32>
    %c3_25 = arith.constant 3 : index
    %c0_26 = arith.constant 0 : index
    %c0_27 = arith.constant 0 : index
    %37 = vector.load %arg3[%c3_25, %c0_26, %c0_27] : memref<4x1x128xf32, #tpu.memory_space<vmem>>, vector<1x1x128xf32>
    %38 = vector.shape_cast %37 : vector<1x1x128xf32> to vector<1x128xf32>
    %39 = vector.broadcast %38 : vector<1x128xf32> to vector<16x128xf32>
    %40 = arith.addf %36, %39 : vector<16x128xf32>
    %c0_28 = arith.constant 0 : index
    %c0_29 = arith.constant 0 : index
    %41 = vector.load %arg4[%c0_28, %c0_29] : memref<16x128xf32, #tpu.memory_space<vmem>>, vector<16x128xf32>
    tpu.vector_store %arg4[%c0_28, %c0_29], %40 {strides = array<i32>} : memref<16x128xf32, #tpu.memory_space<vmem>>, vector<16x128xf32>,
    return
  }
  func.func @transform_0(%arg0: i32) -> (i32, i32) {
    %c0_i32 = arith.constant 0 : i32
    %c0_i32_0 = arith.constant 0 : i32
    return %arg0, %c0_i32 : i32, i32
  }
  func.func @transform_1(%arg0: i32) -> (i32, i32, i32) {
    %c0_i32 = arith.constant 0 : i32
    %c0_i32_0 = arith.constant 0 : i32
    %c0_i32_1 = arith.constant 0 : i32
    %c0_i32_2 = arith.constant 0 : i32
    return %c0_i32, %c0_i32_0, %c0_i32_1 : i32, i32, i32
  }
  func.func @transform_2(%arg0: i32) -> (i32, i32, i32) {
    %c0_i32 = arith.constant 0 : i32
    %c0_i32_0 = arith.constant 0 : i32
    %c0_i32_1 = arith.constant 0 : i32
    %c0_i32_2 = arith.constant 0 : i32
    return %c0_i32, %c0_i32_0, %c0_i32_1 : i32, i32, i32
  }
  func.func @transform_3(%arg0: i32) -> (i32, i32) {
    %c0_i32 = arith.constant 0 : i32
    %c0_i32_0 = arith.constant 0 : i32
    return %arg0, %c0_i32 : i32, i32
  }
}

</mosaic_0001>

<bundles_post_ra>
// kernel: tpu_custom_call.1
= control target key start
LH: loop header
LB: loop body
LE: loop exit
PB: predicated region body
PF: predicated region fallthrough
CT: control target
= control target key end

     0   :  { %8 = vsyncpa [#allocation3], 0  ;;  %s928_s0 = inlined_call_operand.hbm [shape: bf16[16,128], index: 0, kind: input, shape index: {}]   ;;  %s929_s1 = inlined_call_operand.hbm [shape: bf16[4,128,128], index: 1, kind: input, shape index: {}]   ;;  %s930_s2 = inlined_call_operand.vmem [shape: f32[4,1,128], index: 2, kind: input, shape index: {}]   ;;  %s931_s3 = inlined_call_operand.hbm [shape: f32[16,128], index: 3, kind: output, shape index: {}]  }
   0x1   :  { %9 = vsyncpa [#allocation6], 0 }
   0x2   :  { %10 = vsyncpa [#allocation4], 0  ;;  %s811_s12 = smov [#allocation2]   ;;  %s739_s16 = scalar_lea.hbm %s928_s0, 128 }
   0x3   :  { %s16_s13 = sshll.u32 %s811_s12, 4  ;;  %p740_p0 = scmp.ne.s32.totalorder %s928_s0, %s739_s16  ;;  %s17_s13 = int_to_ptr.vmem [resolvable:$true] %s16_s13 }
   0x4   :  { %p743_p1 = scmp.lt.u32.totalorder %s739_s16, %s928_s0 }
   0x6   :  { %p745_p2 = pnand %p743_p1, %p740_p0 }
   0x8   :  { %748 = shalt.err (!%p745_p2)
}
   0x9   :  { %s749_s21 = scalar_lea.vmem %s17_s13, 128  ;;  %p754_p4 = scmp.lt.s32.totalorder %s17_s13, %s17_s13 }
   0xa   :  { %p750_p3 = scmp.ne.s32.totalorder %s17_s13, %s749_s21  ;;  %p755_p5 = scmp.lt.s32.totalorder %s749_s21, %s749_s21 }
   0xc   :  { %p756_p6 = por %p755_p5, %p754_p4 }
   0xe   :  { %p757_p7 = pnand %p756_p6, %p750_p3 }
  0x10   :  { %760 = shalt.err (!%p757_p7)
}
  0x11   :  { %s812_s22 = smov 64   ;;  %s813_s23 = smov 4  }
  0x12   :  { %22 = dma.hbm_to_vmem [thread:$0]  %s928_s0, 128, %s17_s13, [#allocation3], %s812_s22, %s812_s22, %s813_s23  }
  0x13   :  { %s814_s26 = smov [#allocation5]   ;;  %s761_s30 = scalar_lea.hbm %s929_s1, 4096 }
  0x14   :  { %s28_s27 = sshll.u32 %s814_s26, 4  ;;  %p762_p8 = scmp.ne.s32.totalorder %s929_s1, %s761_s30  ;;  %s29_s27 = int_to_ptr.vmem [resolvable:$true] %s28_s27 }
  0x15   :  { %p765_p9 = scmp.lt.u32.totalorder %s761_s30, %s929_s1 }
  0x17   :  { %p767_p10 = pnand %p765_p9, %p762_p8 }
  0x19   :  { %770 = shalt.err (!%p767_p10)
}
  0x1a   :  { %s771_s8 = scalar_lea.vmem %s29_s27, 4096  ;;  %p776_p12 = scmp.lt.s32.totalorder %s29_s27, %s29_s27 }
  0x1b   :  { %p772_p11 = scmp.ne.s32.totalorder %s29_s27, %s771_s8  ;;  %p777_p13 = scmp.lt.s32.totalorder %s771_s8, %s771_s8 }
  0x1d   :  { %p778_p0 = por %p777_p13, %p776_p12 }
  0x1f   :  { %p779_p1 = pnand %p778_p0, %p772_p11 }
  0x21   :  { %782 = shalt.err (!%p779_p1)
}
  0x22   :  { %34 = dma.hbm_to_vmem [thread:$0]  %s929_s1, 4096, %s29_s27, [#allocation6], %s812_s22, %s812_s22, %s813_s23  }
  0x23   :  { %805 = dma.done.wait [#allocation3], 128  }
  0x24   :  { %806 = vsyncadd [#allocation3], 4294967168 }
  0x25   :  { %807 = dma.done.wait [#allocation6], 4096  }
  0x26   :  { %808 = vsyncadd [#allocation6], 4294963200  ;;  %v815_v0 = vmov 0.0   ;;  %vm816_vm0 = vmmov 0   ;;  %v706_v1 = vld [vmem:[#allocation5] sm:$0xff]   ;;  %v707_v2 = vld [vmem:[#allocation5 + $0x8] sm:$0xff]  }
  0x27   :  { %617 = vmatprep.subr.bf16.mxu0 %v815_v0  ;;  %633 = vmatprep.mubr.msk.bf16.mxu0 %vm816_vm0, %v815_v0  ;;  %v708_v3 = vld [vmem:[#allocation5 + $0x10] sm:$0xff]   ;;  %v715_v4 = vld [vmem:[#allocation5 + $0x40] sm:$0xff]   ;;  %v709_v5 = vld [vmem:[#allocation5 + $0x18] sm:$0xff]   ;;  %s817_s17 = smov [#allocation7]  }
  0x28   :  { %637 = vmatprep.subr.bf16.mxu1 %v815_v0  ;;  %653 = vmatprep.mubr.msk.bf16.mxu1 %vm816_vm0, %v815_v0  ;;  %v716_v6 = vld [vmem:[#allocation5 + $0x48] sm:$0xff]   ;;  %v710_v7 = vld [vmem:[#allocation5 + $0x20] sm:$0xff]   ;;  %v717_v8 = vld [vmem:[#allocation5 + $0x50] sm:$0xff]   ;;  %s528_s18 = sshll.u32 %s817_s17, 4  ;;  %s529_s18 = int_to_ptr.vmem [resolvable:$true] %s528_s18 }
  0x29   :  { %618 = vmatpush3.bf16.msra.mxu0 %v706_v1  ;;  %638 = vmatpush3.bf16.msra.mxu1 %v715_v4  ;;  %v711_v9 = vld [vmem:[#allocation5 + $0x28] sm:$0xff]   ;;  %v718_v10 = vld [vmem:[#allocation5 + $0x58] sm:$0xff]   ;;  %v712_v11 = vld [vmem:[#allocation5 + $0x30] sm:$0xff]   ;;  %s783_s19 = scalar_lea.vmem %s529_s18, 256  ;;  %p788_p3 = scmp.lt.s32.totalorder %s529_s18, %s529_s18 }
  0x2a   :  { %619 = vmatprep.subr.bf16.mxu0 %v815_v0  ;;  %639 = vmatprep.subr.bf16.mxu1 %v815_v0  ;;  %v719_v12 = vld [vmem:[#allocation5 + $0x60] sm:$0xff]   ;;  %v713_v13 = vld [vmem:[#allocation5 + $0x38] sm:$0xff]   ;;  %v720_v15 = vld [vmem:[#allocation5 + $0x68] sm:$0xff]   ;;  %p784_p2 = scmp.ne.s32.totalorder %s529_s18, %s783_s19  ;;  %p789_p4 = scmp.lt.s32.totalorder %s783_s19, %s783_s19 }
  0x2b   :  { %v714_v14 = vld [vmem:[#allocation2] sm:$0xff]   ;;  %v721_v16 = vld [vmem:[#allocation5 + $0x70] sm:$0xff]   ;;  %v723_v18 = vld [vmem:[#allocation5 + $0x80] sm:$0xff]  }
  0x2c   :  { %v722_v17 = vld [vmem:[#allocation5 + $0x78] sm:$0xff]   ;;  %v724_v19 = vld [vmem:[#allocation5 + $0x88] sm:$0xff]   ;;  %v725_v20 = vld [vmem:[#allocation5 + $0x90] sm:$0xff]   ;;  %p790_p5 = por %p789_p4, %p788_p3 }
  0x2d   :  { %620 = vmatpush3.bf16.msra.mxu0 %v707_v2  ;;  %640 = vmatpush3.bf16.msra.mxu1 %v716_v6  ;;  %v726_v21 = vld [vmem:[#allocation5 + $0x98] sm:$0xff]   ;;  %v727_v22 = vld [vmem:[#allocation5 + $0xa0] sm:$0xff]   ;;  %v728_v35 = vld [vmem:[#allocation5 + $0xa8] sm:$0xff]  }
  0x2e   :  { %621 = vmatprep.subr.bf16.mxu0 %v815_v0  ;;  %641 = vmatprep.subr.bf16.mxu1 %v815_v0  ;;  %v541_v23 = vld [vmem:[%s930_s2] ss:$0 sm:$0xff]  ;;  %v729_v36 = vld [vmem:[#allocation5 + $0xb0] sm:$0xff]   ;;  %v731_v38 = vld [vmem:[#allocation5 + $0xc0] sm:$0xff]   ;;  %p791_p6 = pnand %p790_p5, %p784_p2 }
  0x2f   :  { %v730_v37 = vld [vmem:[#allocation5 + $0xb8] sm:$0xff]   ;;  %v732_v39 = vld [vmem:[#allocation5 + $0xc8] sm:$0xff]   ;;  %v733_v40 = vld [vmem:[#allocation5 + $0xd0] sm:$0xff]  }
  0x30   :  { %v734_v41 = vld [vmem:[#allocation5 + $0xd8] sm:$0xff]   ;;  %v735_v42 = vld [vmem:[#allocation5 + $0xe0] sm:$0xff]   ;;  %v736_v55 = vld [vmem:[#allocation5 + $0xe8] sm:$0xff]  }
  0x31   :  { %622 = vmatpush3.bf16.msra.mxu0 %v708_v3  ;;  %642 = vmatpush3.bf16.msra.mxu1 %v717_v8  ;;  %v552_v43 = vld [vmem:[%s930_s2 + $0x1] ss:$0 sm:$0xff]  ;;  %v737_v56 = vld [vmem:[#allocation5 + $0xf0] sm:$0xff]   ;;  %v562_v58 = vld [vmem:[%s930_s2 + $0x2] ss:$0 sm:$0xff] }
  0x32   :  { %623 = vmatprep.subr.bf16.mxu0 %v815_v0  ;;  %643 = vmatprep.subr.bf16.mxu1 %v815_v0  ;;  %v738_v57 = vld [vmem:[#allocation5 + $0xf8] sm:$0xff]  }
  0x35   :  { %624 = vmatpush3.bf16.msra.mxu0 %v709_v5  ;;  %644 = vmatpush3.bf16.msra.mxu1 %v718_v10 }
  0x36   :  { %625 = vmatprep.subr.bf16.mxu0 %v815_v0  ;;  %645 = vmatprep.subr.bf16.mxu1 %v815_v0 }
  0x39   :  { %626 = vmatpush3.bf16.msra.mxu0 %v710_v7  ;;  %646 = vmatpush3.bf16.msra.mxu1 %v719_v12 }
  0x3a   :  { %627 = vmatprep.subr.bf16.mxu0 %v815_v0  ;;  %647 = vmatprep.subr.bf16.mxu1 %v815_v0 }
  0x3d   :  { %628 = vmatpush3.bf16.msra.mxu0 %v711_v9  ;;  %648 = vmatpush3.bf16.msra.mxu1 %v720_v15 }
  0x3e   :  { %629 = vmatprep.subr.bf16.mxu0 %v815_v0  ;;  %649 = vmatprep.subr.bf16.mxu1 %v815_v0 }
  0x41   :  { %630 = vmatpush3.bf16.msra.mxu0 %v712_v11  ;;  %650 = vmatpush3.bf16.msra.mxu1 %v721_v16 }
  0x42   :  { %631 = vmatprep.subr.bf16.mxu0 %v815_v0  ;;  %651 = vmatprep.subr.bf16.mxu1 %v815_v0 }
  0x45   :  { %632 = vmatpush3.bf16.msra.mxu0 %v713_v13  ;;  %652 = vmatpush3.bf16.msra.mxu1 %v722_v17 }
  0x46   :  { %657 = vmatprep.subr.bf16.mxu0 %v815_v0  ;;  %677 = vmatprep.subr.bf16.mxu1 %v815_v0 }
  0x48   :  { %634 = vmatmul.mubr.bf16.vlgmr.msra.gmra.mrb[0].mxu0 %v714_v14 }
  0x49   :  { %673 = vmatprep.mubr.msk.bf16.mxu0 %vm816_vm0, %v815_v0  ;;  %658 = vmatpush3.bf16.msra.mxu0 %v723_v18 }
  0x4a   :  { %659 = vmatprep.subr.bf16.mxu0 %v815_v0 }
  0x4d   :  { %660 = vmatpush3.bf16.msra.mxu0 %v724_v19 }
  0x4e   :  { %661 = vmatprep.subr.bf16.mxu0 %v815_v0 }
  0x51   :  { %662 = vmatpush3.bf16.msra.mxu0 %v725_v20 }
  0x52   :  { %663 = vmatprep.subr.bf16.mxu0 %v815_v0 }
  0x55   :  { %664 = vmatpush3.bf16.msra.mxu0 %v726_v21 }
  0x56   :  { %665 = vmatprep.subr.bf16.mxu0 %v815_v0 }
  0x59   :  { %666 = vmatpush3.bf16.msra.mxu0 %v727_v22 }
  0x5a   :  { %667 = vmatprep.subr.bf16.mxu0 %v815_v0 }
  0x5d   :  { %668 = vmatpush3.bf16.msra.mxu0 %v728_v35 }
  0x5e   :  { %669 = vmatprep.subr.bf16.mxu0 %v815_v0 }
  0x61   :  { %670 = vmatpush3.bf16.msra.mxu0 %v729_v36 }
  0x62   :  { %671 = vmatprep.subr.bf16.mxu0 %v815_v0 }
  0x65   :  { %672 = vmatpush3.bf16.msra.mxu0 %v730_v37 }
 0x11b   :  { %v157_v24 = vpop.f32.mrb[0].mxu0 }
 0x11c   :  { %v158_v25 = vadd.f32 %v541_v23, %v157_v24  ;;  %v635_v26 = vpop.f32.mrb[1].mxu0 }
 0x11d   :  { %v160_v27 = vpop.f32.mrb[2].mxu0 }
 0x11e   :  { %v164_v28 = vmul.f32 0.01, %v158_v25  ;;  %v161_v29 = vadd.f32 %v541_v23, %v160_v27  ;;  %v636_v30 = vpop.f32.mrb[3].mxu0 }
 0x120   :  { %v165_v31 = vmul.f32 0.01, %v161_v29  ;;  %v166_v32 = vmax.f32 %v158_v25, %v164_v28 }
 0x122   :  { %v167_v33 = vmax.f32 %v161_v29, %v165_v31 }
 0x124   :  { %v168_v34 = vpack.c.bf16 %v167_v33, %v166_v32 }
 0x126   :  { %654 = vmatmul.mubr.bf16.vlgmr.msra.gmra.mrb[0].mxu1 %v168_v34 }
 0x127   :  { %693 = vmatprep.mubr.msk.bf16.mxu1 %vm816_vm0, %v815_v0  ;;  %678 = vmatpush3.bf16.msra.mxu1 %v731_v38 }
 0x128   :  { %679 = vmatprep.subr.bf16.mxu1 %v815_v0 }
 0x12b   :  { %680 = vmatpush3.bf16.msra.mxu1 %v732_v39 }
 0x12c   :  { %681 = vmatprep.subr.bf16.mxu1 %v815_v0 }
 0x12f   :  { %682 = vmatpush3.bf16.msra.mxu1 %v733_v40 }
 0x130   :  { %683 = vmatprep.subr.bf16.mxu1 %v815_v0 }
 0x133   :  { %684 = vmatpush3.bf16.msra.mxu1 %v734_v41 }
 0x134   :  { %685 = vmatprep.subr.bf16.mxu1 %v815_v0 }
 0x137   :  { %686 = vmatpush3.bf16.msra.mxu1 %v735_v42 }
 0x138   :  { %687 = vmatprep.subr.bf16.mxu1 %v815_v0 }
 0x13b   :  { %688 = vmatpush3.bf16.msra.mxu1 %v736_v55 }
 0x13c   :  { %689 = vmatprep.subr.bf16.mxu1 %v815_v0 }
 0x13f   :  { %690 = vmatpush3.bf16.msra.mxu1 %v737_v56 }
 0x140   :  { %691 = vmatprep.subr.bf16.mxu1 %v815_v0  ;;  %v572_v0 = vld [vmem:[%s930_s2 + $0x3] ss:$0 sm:$0xff] }
 0x143   :  { %692 = vmatpush3.bf16.msra.mxu1 %v738_v57 }
 0x1f9   :  { %v276_v44 = vpop.f32.mrb[0].mxu1 }
 0x1fa   :  { %v277_v45 = vadd.f32 %v552_v43, %v276_v44  ;;  %v655_v46 = vpop.f32.mrb[1].mxu1 }
 0x1fb   :  { %v279_v47 = vpop.f32.mrb[2].mxu1 }
 0x1fc   :  { %v283_v48 = vmul.f32 0.01, %v277_v45  ;;  %v280_v49 = vadd.f32 %v552_v43, %v279_v47  ;;  %v656_v50 = vpop.f32.mrb[3].mxu1 }
 0x1fe   :  { %v284_v51 = vmul.f32 0.01, %v280_v49  ;;  %v285_v52 = vmax.f32 %v277_v45, %v283_v48 }
 0x200   :  { %v286_v53 = vmax.f32 %v280_v49, %v284_v51 }
 0x202   :  { %v287_v54 = vpack.c.bf16 %v286_v53, %v285_v52 }
 0x204   :  { %674 = vmatmul.mubr.bf16.vlgmr.msra.gmra.mrb[4].mxu0 %v287_v54 }
 0x2d7   :  { %v395_v59 = vpop.f32.mrb[4].mxu0 }
 0x2d8   :  { %v396_v60 = vadd.f32 %v562_v58, %v395_v59  ;;  %v675_v61 = vpop.f32.mrb[5].mxu0 }
 0x2d9   :  { %v398_v62 = vpop.f32.mrb[6].mxu0 }
 0x2da   :  { %v402_v63 = vmul.f32 0.01, %v396_v60  ;;  %v399_v1 = vadd.f32 %v562_v58, %v398_v62  ;;  %v676_v2 = vpop.f32.mrb[7].mxu0 }
 0x2dc   :  { %v403_v3 = vmul.f32 0.01, %v399_v1  ;;  %v404_v4 = vmax.f32 %v396_v60, %v402_v63 }
 0x2de   :  { %v405_v5 = vmax.f32 %v399_v1, %v403_v3 }
 0x2e0   :  { %v406_v6 = vpack.c.bf16 %v405_v5, %v404_v4 }
 0x2e2   :  { %694 = vmatmul.mubr.bf16.vlgmr.msra.gmra.mrb[4].mxu1 %v406_v6 }
 0x3b5   :  { %v514_v7 = vpop.f32.mrb[4].mxu1 }
 0x3b6   :  { %v515_v8 = vadd.f32 %v572_v0, %v514_v7  ;;  %v695_v9 = vpop.f32.mrb[5].mxu1 }
 0x3b7   :  { %v517_v10 = vpop.f32.mrb[6].mxu1 }
 0x3b8   :  { %521 = vst [vmem:[#allocation7] sm:$0xff] %v515_v8  ;;  %v518_v11 = vadd.f32 %v572_v0, %v517_v10  ;;  %v696_v12 = vpop.f32.mrb[7].mxu1 }
 0x3ba   :  { %522 = vst [vmem:[#allocation7 + $0x8] sm:$0xff] %v518_v11 }
 0x3bb   :  { %794 = shalt.err (!%p791_p6)
}
 0x3bc   :  { %s795_s21 = scalar_lea.hbm %s931_s3, 256 }
 0x3bd   :  { %p796_p7 = scmp.ne.s32.totalorder %s931_s3, %s795_s21  ;;  %p799_p8 = scmp.lt.u32.totalorder %s795_s21, %s931_s3 }
 0x3bf   :  { %p801_p9 = pnand %p799_p8, %p796_p7 }
 0x3c1   :  { %804 = shalt.err (!%p801_p9)
}
 0x3c2   :  { %s818_s26 = smov 128   ;;  %s819_s27 = smov 8  }
 0x3c3   :  { %534 = dma.vmem_to_hbm [thread:$0]  %s529_s18, 256, %s931_s3, [#allocation4], %s818_s26, %s818_s26, %s819_s27  }
 0x3c4   :  { %809 = dma.done.wait [#allocation4], 256  }
 0x3c5   :  { %810 = vsyncadd [#allocation4], 4294967040 }
 0x3c6   :  { %538 = vsyncpa [#allocation3], 1 }
 0x3c7   :  { %539 = vsyncpa [#allocation6], 1 }
 0x3c8   :  { %540 = vsyncpa [#allocation4], 1 }

</bundles_post_ra>
